<compile_context>
chip_gen: v7x
topology: tpu7x:2x2x1
jax: 0.10.0
libtpu: 0.0.40
codegen_flags: <defaults>
</compile_context>

<pallas_src>
import jax
import jax.numpy as jnp
from jax.experimental import pallas as pl
from jax.experimental.pallas import tpu as pltpu


def _round_up(v: int, m: int) -> int:
    return (v + m - 1) // m * m


def _label_smooth_kernel(x_ref, tgt_ref, c_on_ref, c_off_ref, loss_ref):
    # x_ref: (TM, C) logits (any float dtype), upcast after the VMEM load.
    x = x_ref[...].astype(jnp.float32)
    tm, c = x.shape                                    # class axis is untiled,
                                                       # so block C == global C

    # --- log-softmax statistics (no full (TM, C) log_prob materialized) ---
    row_max = jnp.max(x, axis=-1, keepdims=True)
    shifted = x - row_max                              # (TM, C)
    lse = jnp.log(jnp.sum(jnp.exp(shifted), axis=-1, keepdims=True))   # (TM, 1)
    sum_shifted = jnp.sum(shifted, axis=-1, keepdims=True)             # (TM, 1)

    # --- gather shifted[i, t[i]] via compare + select + row reduction ---
    col = jax.lax.broadcasted_iota(jnp.int32, (tm, c), 1)
    tgt = tgt_ref[...]                                 # (TM, 1) int32
    sh_t = jnp.sum(jnp.where(col == tgt, shifted, 0.0),
                   axis=-1, keepdims=True)             # (TM, 1)

    # --- collapsed weighting:
    #   final_weight[i, j] = c_off[i] + (c_on[i] - c_off[i]) * (j == t[i])
    #   loss_i = -( c_off*(sum_j shifted - C*lse) + (c_on - c_off)*(shifted[t] - lse) )
    c_on = c_on_ref[...]                               # (TM, 1) f32
    c_off = c_off_ref[...]                             # (TM, 1) f32
    loss_ref[...] = -(c_off * (sum_shifted - jnp.float32(c) * lse)
                      + (c_on - c_off) * (sh_t - lse))


def label_smooth_loss(x, target, mask, lam, smoothing: float = 0.1,
                      max_block_rows: int = 512):
    """x: (N, C) float logits; target: (N,) int; mask: (N,) or (N,1) bool; lam: scalar."""
    n, c = x.shape
    lam = jnp.asarray(lam, jnp.float32)
    msk = jnp.asarray(mask).reshape(n).astype(jnp.float32)   # mask.squeeze()
    tgt = jnp.asarray(target, jnp.int32)
    eps = jnp.float32(smoothing)

    # Per-row scalar coefficients (O(N) work hoisted out of the (N, C) loop):
    #   c_off = (1-lam) * mask * eps/(C-1)
    #   c_on  = lam + (1-lam) * (mask*(1-eps) + (1-mask))
    # NOTE: C == 1 divides by zero, matching the PyTorch module's behavior.
    c_off = (1.0 - lam) * msk * (eps / jnp.float32(c - 1.0))
    c_on = lam + (1.0 - lam) * (1.0 - msk * eps)

    # --- choose the row-tile height ---------------------------------------
    # Budget: 2 double-buffered logits tiles (native dtype) + a few f32-wide
    # temporaries, kept under the smallest default scoped-VMEM limit (v5e 16 MiB)
    # so the kernel runs unmodified on v5e / v6e / v7x.
    itemsize = jnp.dtype(x.dtype).itemsize
    bytes_per_row = c * (2 * itemsize + 12)
    tm = max(16, min(max_block_rows, (12 * 1024 * 1024) // max(1, bytes_per_row)))
    tm = max(16, (tm // 16) * 16)          # multiple of 16 (bf16 sublane packing)
    tm = min(tm, _round_up(n, 16))
    # TODO(synk): for very large C (>= 64k) additionally tile the class axis with
    # an online logsumexp so the row tile does not collapse.

    # --- pad rows to a multiple of tm; padded rows have c_on = c_off = 0 so
    #     they contribute exactly 0 to the summed loss -----------------------
    n_pad = _round_up(n, tm)
    pad = n_pad - n
    x_p = jnp.pad(x, ((0, pad), (0, 0)))
    tgt_p = jnp.pad(tgt, (0, pad)).reshape(n_pad, 1)
    c_on_p = jnp.pad(c_on, (0, pad)).reshape(n_pad, 1)
    c_off_p = jnp.pad(c_off, (0, pad)).reshape(n_pad, 1)

    grid = (n_pad // tm,)
    row_loss = pl.pallas_call(
        _label_smooth_kernel,
        out_shape=jax.ShapeDtypeStruct((n_pad, 1), jnp.float32),
        grid=grid,
        in_specs=[
            pl.BlockSpec((tm, c), lambda i: (i, 0)),   # logits tile
            pl.BlockSpec((tm, 1), lambda i: (i, 0)),   # targets
            pl.BlockSpec((tm, 1), lambda i: (i, 0)),   # c_on
            pl.BlockSpec((tm, 1), lambda i: (i, 0)),   # c_off
        ],
        out_specs=pl.BlockSpec((tm, 1), lambda i: (i, 0)),
        compiler_params=pltpu.CompilerParams(
            dimension_semantics=("parallel",),         # tiles independent ->
        ),                                             # megacore sharding on v7x
    )(x_p, tgt_p, c_on_p, c_off_p)

    # Final mean over the *true* number of rows (padded rows summed in as 0).
    return jnp.sum(row_loss) / jnp.float32(n)


def _reference(x, target, mask, lam, smoothing=0.1):
    """Pure-JAX reference mirroring the PyTorch forward."""
    n, c = x.shape
    log_prob = jax.nn.log_softmax(x.astype(jnp.float32), axis=-1)
    onehot = jax.nn.one_hot(target, c, dtype=jnp.float32)
    w_smooth = onehot * (1.0 - smoothing) + (1.0 - onehot) * (smoothing / (c - 1.0))
    m = mask.reshape(n, 1).astype(jnp.float32)
    weight = m * w_smooth + (1.0 - m) * onehot
    final_weight = lam * onehot + (1.0 - lam) * weight
    return jnp.mean(jnp.sum(-final_weight * log_prob, axis=-1))


if __name__ == "__main__":
    key = jax.random.PRNGKey(0)
    k1, k2, k3 = jax.random.split(key, 3)

    # Small shapes; N deliberately not a multiple of the tile to exercise padding.
    N, C = 10, 128
    x = jax.random.normal(k1, (N, C), dtype=jnp.float32)
    target = jax.random.randint(k2, (N,), 0, C, dtype=jnp.int32)
    mask = jax.random.bernoulli(k3, 0.5, (N, 1))     # (N, 1) like PyTorch pre-squeeze
    lam = jnp.float32(0.7)
    smoothing = 0.1

    loss = label_smooth_loss(x, target, mask, lam, smoothing=smoothing)
    loss = jax.block_until_ready(loss)

    ref = _reference(x, target, mask, lam, smoothing=smoothing)
    assert jnp.allclose(loss, ref, rtol=1e-5, atol=1e-5), (loss, ref)

    print("KERNEL_OK")
</pallas_src>

<mosaic_0001>
module attributes {stable_mosaic.version = 11 : i64} {
  func.func @_label_smooth_kernel(%arg0: i32, %arg1: memref<16x128xf32, #tpu.memory_space<vmem>>, %arg2: memref<16x1xi32, #tpu.memory_space<vmem>>, %arg3: memref<16x1xf32, #tpu.memory_space<vmem>>, %arg4: memref<16x1xf32, #tpu.memory_space<vmem>>, %arg5: memref<16x1xf32, #tpu.memory_space<vmem>>) attributes {dimension_semantics = [#tpu.dimension_semantics<parallel>], iteration_bounds = array<i64: 1>, scalar_prefetch = 0 : i64, scratch_operands = 0 : i64, tpu.core_type = #tpu.core_type<tc>, window_params = [{transform_indices = @transform_0, window_bounds = array<i64: 16, 128>}, {transform_indices = @transform_1, window_bounds = array<i64: 16, 1>}, {transform_indices = @transform_2, window_bounds = array<i64: 16, 1>}, {transform_indices = @transform_3, window_bounds = array<i64: 16, 1>}, {transform_indices = @transform_4, window_bounds = array<i64: 16, 1>}]} {
    %c0 = arith.constant 0 : index
    %c0_0 = arith.constant 0 : index
    %0 = vector.load %arg1[%c0, %c0_0] : memref<16x128xf32, #tpu.memory_space<vmem>>, vector<16x128xf32>
    %cst = arith.constant dense<0xFF800000> : vector<16xf32>
    %1 = vector.multi_reduction <maximumf>, %0, %cst [1] : vector<16x128xf32> to vector<16xf32>
    %2 = vector.shape_cast %1 : vector<16xf32> to vector<16x1xf32>
    %3 = vector.broadcast %2 : vector<16x1xf32> to vector<16x128xf32>
    %4 = arith.subf %0, %3 : vector<16x128xf32>
    %5 = math.exp %4 : vector<16x128xf32>
    %cst_1 = arith.constant dense<0.000000e+00> : vector<16xf32>
    %6 = vector.multi_reduction <add>, %5, %cst_1 [1] : vector<16x128xf32> to vector<16xf32>
    %7 = vector.shape_cast %6 : vector<16xf32> to vector<16x1xf32>
    %8 = math.log %7 : vector<16x1xf32>
    %cst_2 = arith.constant dense<0.000000e+00> : vector<16xf32>
    %9 = vector.multi_reduction <add>, %4, %cst_2 [1] : vector<16x128xf32> to vector<16xf32>
    %10 = vector.shape_cast %9 : vector<16xf32> to vector<16x1xf32>
    %11 = tpu.iota {dimensions = array<i32: 1>} : vector<16x128xi32>
    %c0_3 = arith.constant 0 : index
    %c0_4 = arith.constant 0 : index
    %12 = vector.load %arg2[%c0_3, %c0_4] : memref<16x1xi32, #tpu.memory_space<vmem>>, vector<16x1xi32>
    %13 = vector.broadcast %12 : vector<16x1xi32> to vector<16x128xi32>
    %14 = arith.cmpi eq, %11, %13 : vector<16x128xi32>
    %cst_5 = arith.constant 0.000000e+00 : f32
    %15 = vector.broadcast %cst_5 : f32 to vector<16x128xf32>
    %16 = arith.select %14, %4, %15 : vector<16x128xi1>, vector<16x128xf32>
    %cst_6 = arith.constant dense<0.000000e+00> : vector<16xf32>
    %17 = vector.multi_reduction <add>, %16, %cst_6 [1] : vector<16x128xf32> to vector<16xf32>
    %18 = vector.shape_cast %17 : vector<16xf32> to vector<16x1xf32>
    %c0_7 = arith.constant 0 : index
    %c0_8 = arith.constant 0 : index
    %19 = vector.load %arg3[%c0_7, %c0_8] : memref<16x1xf32, #tpu.memory_space<vmem>>, vector<16x1xf32>
    %c0_9 = arith.constant 0 : index
    %c0_10 = arith.constant 0 : index
    %20 = vector.load %arg4[%c0_9, %c0_10] : memref<16x1xf32, #tpu.memory_space<vmem>>, vector<16x1xf32>
    %cst_11 = arith.constant 1.280000e+02 : f32
    %21 = vector.broadcast %cst_11 : f32 to vector<16x1xf32>
    %22 = arith.mulf %21, %8 : vector<16x1xf32>
    %23 = arith.subf %10, %22 : vector<16x1xf32>
    %24 = arith.mulf %20, %23 : vector<16x1xf32>
    %25 = arith.subf %19, %20 : vector<16x1xf32>
    %26 = arith.subf %18, %8 : vector<16x1xf32>
    %27 = arith.mulf %25, %26 : vector<16x1xf32>
    %28 = arith.addf %24, %27 : vector<16x1xf32>
    %cst_12 = arith.constant 0.000000e+00 : f32
    %29 = vector.broadcast %cst_12 : f32 to vector<16x1xf32>
    %30 = arith.subf %29, %28 : vector<16x1xf32>
    %c0_13 = arith.constant 0 : index
    %c0_14 = arith.constant 0 : index
    %31 = vector.load %arg5[%c0_13, %c0_14] : memref<16x1xf32, #tpu.memory_space<vmem>>, vector<16x1xf32>
    tpu.vector_store %arg5[%c0_13, %c0_14], %30 {strides = array<i32>} : memref<16x1xf32, #tpu.memory_space<vmem>>, vector<16x1xf32>,
    return
  }
  func.func @transform_0(%arg0: i32) -> (i32, i32) {
    %c0_i32 = arith.constant 0 : i32
    %c0_i32_0 = arith.constant 0 : i32
    return %arg0, %c0_i32 : i32, i32
  }
  func.func @transform_1(%arg0: i32) -> (i32, i32) {
    %c0_i32 = arith.constant 0 : i32
    %c0_i32_0 = arith.constant 0 : i32
    return %arg0, %c0_i32 : i32, i32
  }
  func.func @transform_2(%arg0: i32) -> (i32, i32) {
    %c0_i32 = arith.constant 0 : i32
    %c0_i32_0 = arith.constant 0 : i32
    return %arg0, %c0_i32 : i32, i32
  }
  func.func @transform_3(%arg0: i32) -> (i32, i32) {
    %c0_i32 = arith.constant 0 : i32
    %c0_i32_0 = arith.constant 0 : i32
    return %arg0, %c0_i32 : i32, i32
  }
  func.func @transform_4(%arg0: i32) -> (i32, i32) {
    %c0_i32 = arith.constant 0 : i32
    %c0_i32_0 = arith.constant 0 : i32
    return %arg0, %c0_i32 : i32, i32
  }
}

</mosaic_0001>

<bundles_post_ra>
// kernel: tpu_custom_call.1
= control target key start
LH: loop header
LB: loop body
LE: loop exit
PB: predicated region body
PF: predicated region fallthrough
CT: control target
= control target key end

     0   :  { %v97_v1 = vmov 0   ;;  %v41_v12 = vlaneseq  ;;  %vm79_vm2 = vcmask 7168   ;;  %s153_s0 = inlined_call_operand.vmem [shape: f32[16,128], index: 0, kind: input, shape index: {}]   ;;  %s154_s1 = inlined_call_operand.vmem [shape: s32[16,1], index: 1, kind: input, shape index: {}]   ;;  %s155_s3 = inlined_call_operand.vmem [shape: f32[16,1], index: 3, kind: input, shape index: {}]   ;;  %s156_s2 = inlined_call_operand.vmem [shape: f32[16,1], index: 2, kind: input, shape index: {}]   ;;  %s157_s4 = inlined_call_operand.vmem [shape: f32[16,1], index: 4, kind: output, shape index: {}]  }
   0x1   :  { %v17_v0 = vld [vmem:[%s153_s0] sm:$0xff]  ;;  %87 = vset.pattern.permute.xlu1 %v97_v1  ;;  %88 = vset.pattern.permute.xlu0 %v97_v1  ;;  %v18_v3 = vld [vmem:[%s153_s0 + $0x8] sm:$0xff] }
   0x2   :  { %v43_v2 = vld [vmem:[%s154_s1] sm:$0xff]  ;;  %19 = vmax.xlane.f32.xlu0 %v17_v0  ;;  %v44_v4 = vld [vmem:[%s154_s1 + $0x8] sm:$0xff]  ;;  %v42_v15 = vand.u32 127, %v41_v12 }
   0x3   :  { %46 = vperm.xlu1 %87, %v43_v2   ;;  %v61_v24 = vld [vmem:[%s155_s3] sm:$0xff]  ;;  %v62_v29 = vld [vmem:[%s155_s3 + $0x8] sm:$0xff] }
   0x4   :  { %v59_v25 = vld [vmem:[%s156_s2] sm:$0xff]  ;;  %v60_v32 = vld [vmem:[%s156_s2 + $0x8] sm:$0xff] }
   0x5   :  { %v69_v30 = vsub.f32 %v59_v25, %v61_v24  ;;  %v70_v37 = vsub.f32 %v60_v32, %v62_v29 }
   0x6   :  { %21 = vmax.xlane.f32.xlu0 %v18_v3 }
   0x7   :  { %49 = vperm.xlu1 %87, %v44_v4  }
  0x82   :  { %v47_v14 = vpop.permute.xlu1 %46 }
  0x83   :  { %vm51_vm0 = vcmp.eq.s32.totalorder %v42_v15, %v47_v14 }
  0x86   :  { %v50_v16 = vpop.permute.xlu1 %49 }
  0x87   :  { %vm52_vm1 = vcmp.eq.s32.totalorder %v42_v15, %v50_v16 }
  0x8f   :  { %v20_v5 = vpop.xlane.xlu0 %19 }
  0x90   :  { %v23_v6 = vsub.f32 %v17_v0, %v20_v5 }
  0x92   :  { %v25_v7 = vmul.f32 1.442695, %v23_v6  ;;  %v53_v17 = vsel %vm51_vm0, %v23_v6, 0.0 }
  0x93   :  { %v22_v8 = vpop.xlane.xlu0 %21 }
  0x94   :  { %89 = vpow2.f32 %v25_v7  ;;  %v24_v9 = vsub.f32 %v18_v3, %v22_v8 }
  0x96   :  { %v27_v10 = vmul.f32 1.442695, %v24_v9  ;;  %v54_v18 = vsel %vm52_vm1, %v24_v9, 0.0 }
  0x98   :  { %91 = vpow2.f32 %v27_v10 }
  0x9e   :  { %v90_v11 = vpop.eup %89 }
  0x9f   :  { %29 = vadd.xlane.f32.xlu0 %v90_v11 }
  0xa2   :  { %v92_v13 = vpop.eup %91 }
  0xa3   :  { %37 = vadd.xlane.f32.xlu0 %v23_v6  ;;  %31 = vadd.xlane.f32.xlu1 %v92_v13 }
  0xa7   :  { %39 = vadd.xlane.f32.xlu0 %v24_v9 }
  0xab   :  { %55 = vadd.xlane.f32.xlu0 %v53_v17 }
  0xaf   :  { %57 = vadd.xlane.f32.xlu0 %v54_v18 }
 0x12c   :  { %v30_v19 = vpop.xlane.xlu0 %29 }
 0x12d   :  { %93 = vlog2.f32 %v30_v19 }
 0x130   :  { %v32_v20 = vpop.xlane.xlu1 %31  ;;  %v38_v21 = vpop.xlane.xlu0 %37 }
 0x131   :  { %95 = vlog2.f32 %v32_v20 }
 0x134   :  { %v40_v22 = vpop.xlane.xlu0 %39 }
 0x137   :  { %v94_v23 = vpop.eup %93 }
 0x138   :  { %v34_v26 = vmul.f32 0.6931472, %v94_v23  ;;  %v56_v27 = vpop.xlane.xlu0 %55 }
 0x13a   :  { %v63_v28 = vmul.f32 128.0, %v34_v26  ;;  %v71_v31 = vsub.f32 %v56_v27, %v34_v26 }
 0x13b   :  { %v96_v33 = vpop.eup %95 }
 0x13c   :  { %v36_v34 = vmul.f32 0.6931472, %v96_v33  ;;  %v65_v35 = vsub.f32 %v38_v21, %v63_v28  ;;  %v58_v36 = vpop.xlane.xlu0 %57  ;;  %v73_v40 = vmul.f32 %v71_v31, %v69_v30 }
 0x13e   :  { %v67_v38 = vmul.f32 %v65_v35, %v61_v24  ;;  %v64_v39 = vmul.f32 128.0, %v36_v34  ;;  %v72_v41 = vsub.f32 %v58_v36, %v36_v34 }
 0x140   :  { %v66_v42 = vsub.f32 %v40_v22, %v64_v39  ;;  %v75_v43 = vadd.f32 %v73_v40, %v67_v38  ;;  %v74_v46 = vmul.f32 %v72_v41, %v70_v37 }
 0x142   :  { %v68_v44 = vmul.f32 %v66_v42, %v62_v29  ;;  %v77_v45 = vsub.f32 0.0, %v75_v43 }
 0x144   :  { %80 = vst.msk [vmem:[%s157_s4] sm:$0xff] %vm79_vm2, %v77_v45  ;;  %v76_v47 = vadd.f32 %v74_v46, %v68_v44 }
 0x146   :  { %v78_v48 = vsub.f32 0.0, %v76_v47 }
 0x148   :  { %81 = vst.msk [vmem:[%s157_s4 + $0x8] sm:$0xff] %vm79_vm2, %v78_v48 }

</bundles_post_ra>
